<compile_context>
chip_gen: v6e
topology: v6e:2x2x1
jax: 0.10.0
libtpu: 0.0.40
codegen_flags: <defaults>
</compile_context>

<pallas_src>
import jax
import jax.numpy as jnp
from jax.experimental import pallas as pl
from jax.experimental.pallas import tpu as pltpu

LEAKY_SLOPE = 0.2
BN_EPS = 0.8          # BatchNorm1d(out_feat, 0.8): second positional arg is eps
N_BN_BLOCKS = 4

# Row layout of the packed vector slab ([15, H] f32):
#   row 0        : b0                (first Linear bias)
#   rows 1..4    : bh[i]             (hidden Linear biases)
#   rows 5..8    : gamma[i]          (BatchNorm weights)
#   rows 9..12   : beta[i]           (BatchNorm biases)
#   row 13       : b5 (broadcast)    (head bias, scalar)
#   row 14       : w5 row            (head weight, [H])
_ROW_B0 = 0
_ROW_BH = 1
_ROW_G = 1 + N_BN_BLOCKS
_ROW_BE = 1 + 2 * N_BN_BLOCKS
_ROW_B5 = 1 + 3 * N_BN_BLOCKS
_ROW_W5 = _ROW_B5 + 1
_N_ROWS = _ROW_W5 + 1  # 15


def _leaky_relu(x):
    return jnp.where(x > 0, x, LEAKY_SLOPE * x)


def generator_kernel(z_ref, w0_ref, wh_ref, vec_ref, out_ref):
    B = z_ref.shape[0]
    inv_b = 1.0 / B

    # Block 0: Linear(in, H) + LeakyReLU (no normalization)
    h = jnp.dot(z_ref[...], w0_ref[...], preferred_element_type=jnp.float32)
    h = _leaky_relu(h + vec_ref[_ROW_B0:_ROW_B0 + 1, :])

    # 4 x [Linear(H, H) + BatchNorm1d(batch stats, eps=0.8) + LeakyReLU]
    for i in range(N_BN_BLOCKS):                       # static unroll
        y = jnp.dot(h, wh_ref[i], preferred_element_type=jnp.float32)
        y = y + vec_ref[_ROW_BH + i:_ROW_BH + i + 1, :]

        # Single-pass batch statistics: the two reductions are independent,
        # so the XLU work is not serialized behind mu.
        s1 = jnp.sum(y, axis=0, keepdims=True)
        s2 = jnp.sum(y * y, axis=0, keepdims=True)
        mu = s1 * inv_b
        var = s2 * inv_b - mu * mu                     # biased (training-mode) var

        # Fused BN affine: h = leaky(y * scale + shift)
        scale = vec_ref[_ROW_G + i:_ROW_G + i + 1, :] * jax.lax.rsqrt(var + BN_EPS)
        shift = vec_ref[_ROW_BE + i:_ROW_BE + i + 1, :] - mu * scale
        h = _leaky_relu(y * scale + shift)

    # Head: Linear(H, 1) + Tanh as VPU multiply + lane reduction (no MXU).
    o = jnp.sum(h * vec_ref[_ROW_W5:_ROW_W5 + 1, :], axis=-1, keepdims=True)
    out_ref[...] = jnp.tanh(o + vec_ref[_ROW_B5:_ROW_B5 + 1, 0:1])


def pack_params(params):
    """Pack raw per-layer params into (w0, wh_stack, vector_slab)."""
    (w0, b0, wh, bh, gh, beh, w5, b5) = params
    H = w0.shape[1]
    vec = jnp.concatenate(
        [
            b0.reshape(1, H),
            bh.reshape(N_BN_BLOCKS, H),
            gh.reshape(N_BN_BLOCKS, H),
            beh.reshape(N_BN_BLOCKS, H),
            jnp.broadcast_to(b5.reshape(1, 1), (1, H)),
            w5.reshape(1, H),
        ],
        axis=0,
    ).astype(jnp.float32)
    assert vec.shape == (_N_ROWS, H)
    return w0, wh, vec


def generator_forward(z, packed):
    w0, wh, vec = packed
    B = z.shape[0]
    vmem = pl.BlockSpec(memory_space=pltpu.MemorySpace.VMEM)
    # Grid-less: whole forward fits in VMEM; extra grid steps / buffering would
    # only add per-step overhead at this size. (For many independent
    # minibatches, add a leading "parallel" grid axis instead.)
    return pl.pallas_call(
        generator_kernel,
        out_shape=jax.ShapeDtypeStruct((B, 1), jnp.float32),
        in_specs=[vmem] * 4,
        out_specs=vmem,
    )(z, w0, wh, vec)


def init_params(key, input_size, hidden_size):
    ks = jax.random.split(key, 8)
    scale_in = 1.0 / jnp.sqrt(input_size)
    scale_h = 1.0 / jnp.sqrt(hidden_size)
    w0 = jax.random.uniform(ks[0], (input_size, hidden_size), jnp.float32,
                            -scale_in, scale_in)
    b0 = jax.random.uniform(ks[1], (1, hidden_size), jnp.float32,
                            -scale_in, scale_in)
    wh = jax.random.uniform(ks[2], (N_BN_BLOCKS, hidden_size, hidden_size),
                            jnp.float32, -scale_h, scale_h)
    bh = jax.random.uniform(ks[3], (N_BN_BLOCKS, 1, hidden_size), jnp.float32,
                            -scale_h, scale_h)
    gh = jnp.ones((N_BN_BLOCKS, 1, hidden_size), jnp.float32)    # BN gamma init
    beh = jnp.zeros((N_BN_BLOCKS, 1, hidden_size), jnp.float32)  # BN beta init
    w5 = jax.random.uniform(ks[4], (hidden_size, 1), jnp.float32,
                            -scale_h, scale_h)
    b5 = jax.random.uniform(ks[5], (1, 1), jnp.float32, -scale_h, scale_h)
    return (w0, b0, wh, bh, gh, beh, w5, b5)


def reference_forward(z, params):
    (w0, b0, wh, bh, gh, beh, w5, b5) = params
    h = z @ w0 + b0
    h = jnp.where(h > 0, h, LEAKY_SLOPE * h)
    for i in range(N_BN_BLOCKS):
        y = h @ wh[i] + bh[i]
        mu = jnp.mean(y, axis=0, keepdims=True)
        var = jnp.mean((y - mu) ** 2, axis=0, keepdims=True)
        y = (y - mu) / jnp.sqrt(var + BN_EPS)
        y = y * gh[i] + beh[i]
        h = jnp.where(y > 0, y, LEAKY_SLOPE * y)
    return jnp.tanh(h @ w5 + b5)


if __name__ == "__main__":
    B, INPUT_SIZE, HIDDEN = 8, 16, 32

    key = jax.random.PRNGKey(0)
    k_z, k_p = jax.random.split(key)
    z = jax.random.normal(k_z, (B, INPUT_SIZE), dtype=jnp.float32)
    params = init_params(k_p, INPUT_SIZE, HIDDEN)
    packed = pack_params(params)

    out = generator_forward(z, packed)
    out = jax.block_until_ready(out)

    ref = reference_forward(z, params)
    assert out.shape == (B, 1)
    assert jnp.allclose(out, ref, atol=1e-4, rtol=1e-4), "mismatch vs reference"

    print("KERNEL_OK")
</pallas_src>

<mosaic_0001>
module attributes {stable_mosaic.version = 11 : i64} {
  func.func @generator_kernel(%arg0: memref<8x16xf32, #tpu.memory_space<vmem>>, %arg1: memref<16x32xf32, #tpu.memory_space<vmem>>, %arg2: memref<4x32x32xf32, #tpu.memory_space<vmem>>, %arg3: memref<15x32xf32, #tpu.memory_space<vmem>>, %arg4: memref<8x1xf32, #tpu.memory_space<vmem>>) attributes {dimension_semantics = [], scalar_prefetch = 0 : i64, scratch_operands = 0 : i64, tpu.core_type = #tpu.core_type<tc>} {
    %c0 = arith.constant 0 : index
    %c0_0 = arith.constant 0 : index
    %0 = vector.load %arg0[%c0, %c0_0] : memref<8x16xf32, #tpu.memory_space<vmem>>, vector<8x16xf32>
    %c0_1 = arith.constant 0 : index
    %c0_2 = arith.constant 0 : index
    %1 = vector.load %arg1[%c0_1, %c0_2] : memref<16x32xf32, #tpu.memory_space<vmem>>, vector<16x32xf32>
    %cst = arith.constant dense<0.000000e+00> : vector<8x32xf32>
    %2 = tpu.matmul %0, %1, %cst {dimension_numbers = #tpu.dot_dimension_numbers<[1], [0], [0], [1], [0, 0, 1, 1], [], []>} : vector<8x16xf32>, vector<16x32xf32>, vector<8x32xf32> -> vector<8x32xf32>
    %c0_3 = arith.constant 0 : index
    %c0_4 = arith.constant 0 : index
    %3 = vector.load %arg3[%c0_3, %c0_4] : memref<15x32xf32, #tpu.memory_space<vmem>>, vector<1x32xf32>
    %4 = vector.broadcast %3 : vector<1x32xf32> to vector<8x32xf32>
    %5 = arith.addf %2, %4 : vector<8x32xf32>
    %cst_5 = arith.constant 0.000000e+00 : f32
    %6 = vector.broadcast %cst_5 : f32 to vector<8x32xf32>
    %7 = arith.cmpf ogt, %5, %6 : vector<8x32xf32>
    %cst_6 = arith.constant 2.000000e-01 : f32
    %8 = vector.broadcast %cst_6 : f32 to vector<8x32xf32>
    %9 = arith.mulf %8, %5 : vector<8x32xf32>
    %10 = arith.select %7, %5, %9 : vector<8x32xi1>, vector<8x32xf32>
    %c0_7 = arith.constant 0 : index
    %c0_8 = arith.constant 0 : index
    %c0_9 = arith.constant 0 : index
    %11 = vector.load %arg2[%c0_7, %c0_8, %c0_9] : memref<4x32x32xf32, #tpu.memory_space<vmem>>, vector<1x32x32xf32>
    %12 = vector.shape_cast %11 : vector<1x32x32xf32> to vector<32x32xf32>
    %cst_10 = arith.constant dense<0.000000e+00> : vector<8x32xf32>
    %13 = tpu.matmul %10, %12, %cst_10 {dimension_numbers = #tpu.dot_dimension_numbers<[1], [0], [0], [1], [0, 0, 1, 1], [], []>} : vector<8x32xf32>, vector<32x32xf32>, vector<8x32xf32> -> vector<8x32xf32>
    %c1 = arith.constant 1 : index
    %c0_11 = arith.constant 0 : index
    %14 = vector.load %arg3[%c1, %c0_11] : memref<15x32xf32, #tpu.memory_space<vmem>>, vector<1x32xf32>
    %15 = vector.broadcast %14 : vector<1x32xf32> to vector<8x32xf32>
    %16 = arith.addf %13, %15 : vector<8x32xf32>
    %cst_12 = arith.constant dense<0.000000e+00> : vector<32xf32>
    %17 = vector.multi_reduction <add>, %16, %cst_12 [0] : vector<8x32xf32> to vector<32xf32>
    %18 = vector.shape_cast %17 : vector<32xf32> to vector<1x32xf32>
    %19 = arith.mulf %16, %16 : vector<8x32xf32>
    %cst_13 = arith.constant dense<0.000000e+00> : vector<32xf32>
    %20 = vector.multi_reduction <add>, %19, %cst_13 [0] : vector<8x32xf32> to vector<32xf32>
    %21 = vector.shape_cast %20 : vector<32xf32> to vector<1x32xf32>
    %cst_14 = arith.constant 1.250000e-01 : f32
    %22 = vector.broadcast %cst_14 : f32 to vector<1x32xf32>
    %23 = arith.mulf %18, %22 : vector<1x32xf32>
    %cst_15 = arith.constant 1.250000e-01 : f32
    %24 = vector.broadcast %cst_15 : f32 to vector<1x32xf32>
    %25 = arith.mulf %21, %24 : vector<1x32xf32>
    %26 = arith.mulf %23, %23 : vector<1x32xf32>
    %27 = arith.subf %25, %26 : vector<1x32xf32>
    %c5 = arith.constant 5 : index
    %c0_16 = arith.constant 0 : index
    %28 = vector.load %arg3[%c5, %c0_16] : memref<15x32xf32, #tpu.memory_space<vmem>>, vector<1x32xf32>
    %cst_17 = arith.constant 8.000000e-01 : f32
    %29 = vector.broadcast %cst_17 : f32 to vector<1x32xf32>
    %30 = arith.addf %27, %29 : vector<1x32xf32>
    %31 = math.rsqrt %30 : vector<1x32xf32>
    %32 = arith.mulf %28, %31 : vector<1x32xf32>
    %c9 = arith.constant 9 : index
    %c0_18 = arith.constant 0 : index
    %33 = vector.load %arg3[%c9, %c0_18] : memref<15x32xf32, #tpu.memory_space<vmem>>, vector<1x32xf32>
    %34 = arith.mulf %23, %32 : vector<1x32xf32>
    %35 = arith.subf %33, %34 : vector<1x32xf32>
    %36 = vector.broadcast %32 : vector<1x32xf32> to vector<8x32xf32>
    %37 = arith.mulf %16, %36 : vector<8x32xf32>
    %38 = vector.broadcast %35 : vector<1x32xf32> to vector<8x32xf32>
    %39 = arith.addf %37, %38 : vector<8x32xf32>
    %cst_19 = arith.constant 0.000000e+00 : f32
    %40 = vector.broadcast %cst_19 : f32 to vector<8x32xf32>
    %41 = arith.cmpf ogt, %39, %40 : vector<8x32xf32>
    %cst_20 = arith.constant 2.000000e-01 : f32
    %42 = vector.broadcast %cst_20 : f32 to vector<8x32xf32>
    %43 = arith.mulf %42, %39 : vector<8x32xf32>
    %44 = arith.select %41, %39, %43 : vector<8x32xi1>, vector<8x32xf32>
    %c1_21 = arith.constant 1 : index
    %c0_22 = arith.constant 0 : index
    %c0_23 = arith.constant 0 : index
    %45 = vector.load %arg2[%c1_21, %c0_22, %c0_23] : memref<4x32x32xf32, #tpu.memory_space<vmem>>, vector<1x32x32xf32>
    %46 = vector.shape_cast %45 : vector<1x32x32xf32> to vector<32x32xf32>
    %cst_24 = arith.constant dense<0.000000e+00> : vector<8x32xf32>
    %47 = tpu.matmul %44, %46, %cst_24 {dimension_numbers = #tpu.dot_dimension_numbers<[1], [0], [0], [1], [0, 0, 1, 1], [], []>} : vector<8x32xf32>, vector<32x32xf32>, vector<8x32xf32> -> vector<8x32xf32>
    %c2 = arith.constant 2 : index
    %c0_25 = arith.constant 0 : index
    %48 = vector.load %arg3[%c2, %c0_25] : memref<15x32xf32, #tpu.memory_space<vmem>>, vector<1x32xf32>
    %49 = vector.broadcast %48 : vector<1x32xf32> to vector<8x32xf32>
    %50 = arith.addf %47, %49 : vector<8x32xf32>
    %cst_26 = arith.constant dense<0.000000e+00> : vector<32xf32>
    %51 = vector.multi_reduction <add>, %50, %cst_26 [0] : vector<8x32xf32> to vector<32xf32>
    %52 = vector.shape_cast %51 : vector<32xf32> to vector<1x32xf32>
    %53 = arith.mulf %50, %50 : vector<8x32xf32>
    %cst_27 = arith.constant dense<0.000000e+00> : vector<32xf32>
    %54 = vector.multi_reduction <add>, %53, %cst_27 [0] : vector<8x32xf32> to vector<32xf32>
    %55 = vector.shape_cast %54 : vector<32xf32> to vector<1x32xf32>
    %cst_28 = arith.constant 1.250000e-01 : f32
    %56 = vector.broadcast %cst_28 : f32 to vector<1x32xf32>
    %57 = arith.mulf %52, %56 : vector<1x32xf32>
    %cst_29 = arith.constant 1.250000e-01 : f32
    %58 = vector.broadcast %cst_29 : f32 to vector<1x32xf32>
    %59 = arith.mulf %55, %58 : vector<1x32xf32>
    %60 = arith.mulf %57, %57 : vector<1x32xf32>
    %61 = arith.subf %59, %60 : vector<1x32xf32>
    %c6 = arith.constant 6 : index
    %c0_30 = arith.constant 0 : index
    %62 = vector.load %arg3[%c6, %c0_30] : memref<15x32xf32, #tpu.memory_space<vmem>>, vector<1x32xf32>
    %cst_31 = arith.constant 8.000000e-01 : f32
    %63 = vector.broadcast %cst_31 : f32 to vector<1x32xf32>
    %64 = arith.addf %61, %63 : vector<1x32xf32>
    %65 = math.rsqrt %64 : vector<1x32xf32>
    %66 = arith.mulf %62, %65 : vector<1x32xf32>
    %c10 = arith.constant 10 : index
    %c0_32 = arith.constant 0 : index
    %67 = vector.load %arg3[%c10, %c0_32] : memref<15x32xf32, #tpu.memory_space<vmem>>, vector<1x32xf32>
    %68 = arith.mulf %57, %66 : vector<1x32xf32>
    %69 = arith.subf %67, %68 : vector<1x32xf32>
    %70 = vector.broadcast %66 : vector<1x32xf32> to vector<8x32xf32>
    %71 = arith.mulf %50, %70 : vector<8x32xf32>
    %72 = vector.broadcast %69 : vector<1x32xf32> to vector<8x32xf32>
    %73 = arith.addf %71, %72 : vector<8x32xf32>
    %cst_33 = arith.constant 0.000000e+00 : f32
    %74 = vector.broadcast %cst_33 : f32 to vector<8x32xf32>
    %75 = arith.cmpf ogt, %73, %74 : vector<8x32xf32>
    %cst_34 = arith.constant 2.000000e-01 : f32
    %76 = vector.broadcast %cst_34 : f32 to vector<8x32xf32>
    %77 = arith.mulf %76, %73 : vector<8x32xf32>
    %78 = arith.select %75, %73, %77 : vector<8x32xi1>, vector<8x32xf32>
    %c2_35 = arith.constant 2 : index
    %c0_36 = arith.constant 0 : index
    %c0_37 = arith.constant 0 : index
    %79 = vector.load %arg2[%c2_35, %c0_36, %c0_37] : memref<4x32x32xf32, #tpu.memory_space<vmem>>, vector<1x32x32xf32>
    %80 = vector.shape_cast %79 : vector<1x32x32xf32> to vector<32x32xf32>
    %cst_38 = arith.constant dense<0.000000e+00> : vector<8x32xf32>
    %81 = tpu.matmul %78, %80, %cst_38 {dimension_numbers = #tpu.dot_dimension_numbers<[1], [0], [0], [1], [0, 0, 1, 1], [], []>} : vector<8x32xf32>, vector<32x32xf32>, vector<8x32xf32> -> vector<8x32xf32>
    %c3 = arith.constant 3 : index
    %c0_39 = arith.constant 0 : index
    %82 = vector.load %arg3[%c3, %c0_39] : memref<15x32xf32, #tpu.memory_space<vmem>>, vector<1x32xf32>
    %83 = vector.broadcast %82 : vector<1x32xf32> to vector<8x32xf32>
    %84 = arith.addf %81, %83 : vector<8x32xf32>
    %cst_40 = arith.constant dense<0.000000e+00> : vector<32xf32>
    %85 = vector.multi_reduction <add>, %84, %cst_40 [0] : vector<8x32xf32> to vector<32xf32>
    %86 = vector.shape_cast %85 : vector<32xf32> to vector<1x32xf32>
    %87 = arith.mulf %84, %84 : vector<8x32xf32>
    %cst_41 = arith.constant dense<0.000000e+00> : vector<32xf32>
    %88 = vector.multi_reduction <add>, %87, %cst_41 [0] : vector<8x32xf32> to vector<32xf32>
    %89 = vector.shape_cast %88 : vector<32xf32> to vector<1x32xf32>
    %cst_42 = arith.constant 1.250000e-01 : f32
    %90 = vector.broadcast %cst_42 : f32 to vector<1x32xf32>
    %91 = arith.mulf %86, %90 : vector<1x32xf32>
    %cst_43 = arith.constant 1.250000e-01 : f32
    %92 = vector.broadcast %cst_43 : f32 to vector<1x32xf32>
    %93 = arith.mulf %89, %92 : vector<1x32xf32>
    %94 = arith.mulf %91, %91 : vector<1x32xf32>
    %95 = arith.subf %93, %94 : vector<1x32xf32>
    %c7 = arith.constant 7 : index
    %c0_44 = arith.constant 0 : index
    %96 = vector.load %arg3[%c7, %c0_44] : memref<15x32xf32, #tpu.memory_space<vmem>>, vector<1x32xf32>
    %cst_45 = arith.constant 8.000000e-01 : f32
    %97 = vector.broadcast %cst_45 : f32 to vector<1x32xf32>
    %98 = arith.addf %95, %97 : vector<1x32xf32>
    %99 = math.rsqrt %98 : vector<1x32xf32>
    %100 = arith.mulf %96, %99 : vector<1x32xf32>
    %c11 = arith.constant 11 : index
    %c0_46 = arith.constant 0 : index
    %101 = vector.load %arg3[%c11, %c0_46] : memref<15x32xf32, #tpu.memory_space<vmem>>, vector<1x32xf32>
    %102 = arith.mulf %91, %100 : vector<1x32xf32>
    %103 = arith.subf %101, %102 : vector<1x32xf32>
    %104 = vector.broadcast %100 : vector<1x32xf32> to vector<8x32xf32>
    %105 = arith.mulf %84, %104 : vector<8x32xf32>
    %106 = vector.broadcast %103 : vector<1x32xf32> to vector<8x32xf32>
    %107 = arith.addf %105, %106 : vector<8x32xf32>
    %cst_47 = arith.constant 0.000000e+00 : f32
    %108 = vector.broadcast %cst_47 : f32 to vector<8x32xf32>
    %109 = arith.cmpf ogt, %107, %108 : vector<8x32xf32>
    %cst_48 = arith.constant 2.000000e-01 : f32
    %110 = vector.broadcast %cst_48 : f32 to vector<8x32xf32>
    %111 = arith.mulf %110, %107 : vector<8x32xf32>
    %112 = arith.select %109, %107, %111 : vector<8x32xi1>, vector<8x32xf32>
    %c3_49 = arith.constant 3 : index
    %c0_50 = arith.constant 0 : index
    %c0_51 = arith.constant 0 : index
    %113 = vector.load %arg2[%c3_49, %c0_50, %c0_51] : memref<4x32x32xf32, #tpu.memory_space<vmem>>, vector<1x32x32xf32>
    %114 = vector.shape_cast %113 : vector<1x32x32xf32> to vector<32x32xf32>
    %cst_52 = arith.constant dense<0.000000e+00> : vector<8x32xf32>
    %115 = tpu.matmul %112, %114, %cst_52 {dimension_numbers = #tpu.dot_dimension_numbers<[1], [0], [0], [1], [0, 0, 1, 1], [], []>} : vector<8x32xf32>, vector<32x32xf32>, vector<8x32xf32> -> vector<8x32xf32>
    %c4 = arith.constant 4 : index
    %c0_53 = arith.constant 0 : index
    %116 = vector.load %arg3[%c4, %c0_53] : memref<15x32xf32, #tpu.memory_space<vmem>>, vector<1x32xf32>
    %117 = vector.broadcast %116 : vector<1x32xf32> to vector<8x32xf32>
    %118 = arith.addf %115, %117 : vector<8x32xf32>
    %cst_54 = arith.constant dense<0.000000e+00> : vector<32xf32>
    %119 = vector.multi_reduction <add>, %118, %cst_54 [0] : vector<8x32xf32> to vector<32xf32>
    %120 = vector.shape_cast %119 : vector<32xf32> to vector<1x32xf32>
    %121 = arith.mulf %118, %118 : vector<8x32xf32>
    %cst_55 = arith.constant dense<0.000000e+00> : vector<32xf32>
    %122 = vector.multi_reduction <add>, %121, %cst_55 [0] : vector<8x32xf32> to vector<32xf32>
    %123 = vector.shape_cast %122 : vector<32xf32> to vector<1x32xf32>
    %cst_56 = arith.constant 1.250000e-01 : f32
    %124 = vector.broadcast %cst_56 : f32 to vector<1x32xf32>
    %125 = arith.mulf %120, %124 : vector<1x32xf32>
    %cst_57 = arith.constant 1.250000e-01 : f32
    %126 = vector.broadcast %cst_57 : f32 to vector<1x32xf32>
    %127 = arith.mulf %123, %126 : vector<1x32xf32>
    %128 = arith.mulf %125, %125 : vector<1x32xf32>
    %129 = arith.subf %127, %128 : vector<1x32xf32>
    %c8 = arith.constant 8 : index
    %c0_58 = arith.constant 0 : index
    %130 = vector.load %arg3[%c8, %c0_58] : memref<15x32xf32, #tpu.memory_space<vmem>>, vector<1x32xf32>
    %cst_59 = arith.constant 8.000000e-01 : f32
    %131 = vector.broadcast %cst_59 : f32 to vector<1x32xf32>
    %132 = arith.addf %129, %131 : vector<1x32xf32>
    %133 = math.rsqrt %132 : vector<1x32xf32>
    %134 = arith.mulf %130, %133 : vector<1x32xf32>
    %c12 = arith.constant 12 : index
    %c0_60 = arith.constant 0 : index
    %135 = vector.load %arg3[%c12, %c0_60] : memref<15x32xf32, #tpu.memory_space<vmem>>, vector<1x32xf32>
    %136 = arith.mulf %125, %134 : vector<1x32xf32>
    %137 = arith.subf %135, %136 : vector<1x32xf32>
    %138 = vector.broadcast %134 : vector<1x32xf32> to vector<8x32xf32>
    %139 = arith.mulf %118, %138 : vector<8x32xf32>
    %140 = vector.broadcast %137 : vector<1x32xf32> to vector<8x32xf32>
    %141 = arith.addf %139, %140 : vector<8x32xf32>
    %cst_61 = arith.constant 0.000000e+00 : f32
    %142 = vector.broadcast %cst_61 : f32 to vector<8x32xf32>
    %143 = arith.cmpf ogt, %141, %142 : vector<8x32xf32>
    %cst_62 = arith.constant 2.000000e-01 : f32
    %144 = vector.broadcast %cst_62 : f32 to vector<8x32xf32>
    %145 = arith.mulf %144, %141 : vector<8x32xf32>
    %146 = arith.select %143, %141, %145 : vector<8x32xi1>, vector<8x32xf32>
    %c14 = arith.constant 14 : index
    %c0_63 = arith.constant 0 : index
    %147 = vector.load %arg3[%c14, %c0_63] : memref<15x32xf32, #tpu.memory_space<vmem>>, vector<1x32xf32>
    %148 = vector.broadcast %147 : vector<1x32xf32> to vector<8x32xf32>
    %149 = arith.mulf %146, %148 : vector<8x32xf32>
    %cst_64 = arith.constant dense<0.000000e+00> : vector<8xf32>
    %150 = vector.multi_reduction <add>, %149, %cst_64 [1] : vector<8x32xf32> to vector<8xf32>
    %151 = vector.shape_cast %150 : vector<8xf32> to vector<8x1xf32>
    %c13 = arith.constant 13 : index
    %c0_65 = arith.constant 0 : index
    %152 = vector.load %arg3[%c13, %c0_65] : memref<15x32xf32, #tpu.memory_space<vmem>>, vector<1x1xf32>
    %153 = vector.broadcast %152 : vector<1x1xf32> to vector<8x1xf32>
    %154 = arith.addf %151, %153 : vector<8x1xf32>
    %155 = math.tanh %154 : vector<8x1xf32>
    %c0_66 = arith.constant 0 : index
    %c0_67 = arith.constant 0 : index
    %156 = vector.load %arg4[%c0_66, %c0_67] : memref<8x1xf32, #tpu.memory_space<vmem>>, vector<8x1xf32>
    tpu.vector_store %arg4[%c0_66, %c0_67], %155 {strides = array<i32>} : memref<8x1xf32, #tpu.memory_space<vmem>>, vector<8x1xf32>,
    return
  }
}

</mosaic_0001>

<bundles_post_ra>
// kernel: tpu_custom_call.1
= control target key start
LH: loop header
LB: loop body
LE: loop exit
PB: predicated region body
PF: predicated region fallthrough
CT: control target
= control target key end

     0   :  { %9 = vsyncpa [#allocation3], 0  ;;  %s966_s0 = inlined_call_operand.hbm [shape: f32[8,16], index: 0, kind: input, shape index: {}]   ;;  %s967_s1 = inlined_call_operand.hbm [shape: f32[16,32], index: 1, kind: input, shape index: {}]   ;;  %s968_s2 = inlined_call_operand.hbm [shape: f32[4,32,32], index: 2, kind: input, shape index: {}]   ;;  %s969_s3 = inlined_call_operand.hbm [shape: f32[15,32], index: 3, kind: input, shape index: {}]   ;;  %s970_s4 = inlined_call_operand.vmem [shape: f32[8,1], index: 4, kind: output, shape index: {}]  }
   0x1   :  { %10 = vsyncpa [#allocation5], 0 }
   0x2   :  { %11 = vsyncpa [#allocation8], 0  ;;  %s858_s15 = smov [#allocation4]  }
   0x3   :  { %s27_s16 = sshll.u32 %s858_s15, 4  ;;  %s28_s16 = int_to_ptr.vmem [resolvable:$true] %s27_s16 }
   0x4   :  { %s780_s17 = scalar_lea.vmem %s28_s16, 256  ;;  %p785_p1 = scmp.lt.s32.totalorder %s28_s16, %s28_s16 }
   0x5   :  { %p781_p0 = scmp.ne.s32.totalorder %s28_s16, %s780_s17  ;;  %p786_p2 = scmp.lt.s32.totalorder %s780_s17, %s780_s17 }
   0x7   :  { %p787_p3 = por %p786_p2, %p785_p1 }
   0x9   :  { %p788_p4 = pnand %p787_p3, %p781_p0 }
   0xb   :  { %791 = shalt.err (!%p788_p4)
}
   0xc   :  { %s859_s18 = smov 128   ;;  %s860_s19 = smov 8  }
   0xd   :  { %33 = dma.hbm_to_vmem [thread:$0]  %s967_s1, 256, %s28_s16, [#allocation5], %s859_s18, %s859_s18, %s860_s19  }
   0xe   :  { %s861_s22 = smov [#allocation2]   ;;  %s862_s24 = smov [#allocation6]  }
   0xf   :  { %s18_s23 = sshll.u32 %s861_s22, 4  ;;  %s39_s25 = sshll.u32 %s862_s24, 4  ;;  %s19_s23 = int_to_ptr.vmem [resolvable:$true] %s18_s23  ;;  %s40_s25 = int_to_ptr.vmem [resolvable:$true] %s39_s25 }
  0x10   :  { %s800_s26 = scalar_lea.vmem %s19_s23, 128  ;;  %p805_p6 = scmp.lt.s32.totalorder %s19_s23, %s19_s23 }
  0x11   :  { %p801_p5 = scmp.ne.s32.totalorder %s19_s23, %s800_s26  ;;  %p806_p7 = scmp.lt.s32.totalorder %s800_s26, %s800_s26 }
  0x13   :  { %p807_p8 = por %p806_p7, %p805_p6 }
  0x15   :  { %p808_p9 = pnand %p807_p8, %p801_p5 }
  0x17   :  { %811 = shalt.err (!%p808_p9)
}
  0x18   :  { %21 = dma.hbm_to_vmem [thread:$0]  %s966_s0, 128, %s19_s23, [#allocation3]  }
  0x19   :  { %s820_s29 = scalar_lea.vmem %s40_s25, 2048  ;;  %p825_p11 = scmp.lt.s32.totalorder %s40_s25, %s40_s25 }
  0x1a   :  { %p821_p10 = scmp.ne.s32.totalorder %s40_s25, %s820_s29  ;;  %p826_p12 = scmp.lt.s32.totalorder %s820_s29, %s820_s29 }
  0x1c   :  { %p827_p13 = por %p826_p12, %p825_p11 }
  0x1e   :  { %p828_p0 = pnand %p827_p13, %p821_p10 }
  0x20   :  { %831 = shalt.err (!%p828_p0)
}
  0x21   :  { %45 = dma.hbm_to_vmem [thread:$0]  %s968_s2, 2048, %s40_s25, [#allocation5], %s859_s18, %s859_s18, %s860_s19  }
  0x22   :  { %s863_s5 = smov [#allocation7]  }
  0x23   :  { %s51_s6 = sshll.u32 %s863_s5, 4  ;;  %s52_s6 = int_to_ptr.vmem [resolvable:$true] %s51_s6 }
  0x24   :  { %s840_s7 = scalar_lea.vmem %s52_s6, 256  ;;  %p845_p2 = scmp.lt.s32.totalorder %s52_s6, %s52_s6 }
  0x25   :  { %p841_p1 = scmp.ne.s32.totalorder %s52_s6, %s840_s7  ;;  %p846_p3 = scmp.lt.s32.totalorder %s840_s7, %s840_s7 }
  0x27   :  { %p847_p4 = por %p846_p3, %p845_p2 }
  0x29   :  { %p848_p5 = pnand %p847_p4, %p841_p1 }
  0x2b   :  { %851 = shalt.err (!%p848_p5)
}
  0x2c   :  { %57 = dma.hbm_to_vmem [thread:$0]  %s969_s3, 256, %s52_s6, [#allocation8], %s859_s18, %s859_s18, %s860_s19  }
  0x2d   :  { %852 = dma.done.wait [#allocation3], 128  }
  0x2e   :  { %853 = vsyncadd [#allocation3], 4294967168 }
  0x2f   :  { %854 = dma.done.wait [#allocation5], 2304  }
  0x30   :  { %855 = vsyncadd [#allocation5], 4294964992 }
  0x31   :  { %856 = dma.done.wait [#allocation8], 256  }
  0x32   :  { %857 = vsyncadd [#allocation8], 4294967040  ;;  %v864_v0 = vmov 0.0   ;;  %vm865_vm0 = vmmov 0   ;;  %v72_v1 = vld [vmem:[#allocation4 + $0x8] sm:$0xff]  ;;  %v71_v2 = vld [vmem:[#allocation4] sm:$0xff]  ;;  %v264_v42 = vlaneseq }
  0x33   :  { %703 = vmatprep.subr.mxu0 %v864_v0  ;;  %707 = vmatprep.mubr.msk.f32.mxu0 %vm865_vm0, %v864_v0  ;;  %v70_v3 = vld [vmem:[#allocation2] sm:$0xff]  ;;  %vm78_vm1 = vcmask 130048   ;;  %v158_v4 = vld [vmem:[#allocation6 + $0x18] sm:$0xff]  ;;  %v157_v5 = vld [vmem:[#allocation6 + $0x10] sm:$0xff]  ;;  %vm164_vm3 = vcmask 261120   ;;  %vm659_vm8 = vcmask 7168  }
  0x34   :  { %710 = vmatprep.subr.mxu1 %v864_v0  ;;  %718 = vmatprep.mubr.msk.f32.mxu1 %vm865_vm0, %v864_v0  ;;  %v156_v6 = vld [vmem:[#allocation6 + $0x8] sm:$0xff]  ;;  %v155_v7 = vld [vmem:[#allocation6] sm:$0xff]  ;;  %v281_v14 = vld [vmem:[#allocation6 + $0x38] sm:$0xff]  ;;  %v265_v43 = vshrl.u32 %v264_v42, 7 }
  0x35   :  { %704 = vmatpush3.msra.mxu0 %v72_v1  ;;  %711 = vmatpush3.msra.mxu1 %v158_v4  ;;  %v668_v8 = vld [vmem:[#allocation7] ss:$0 sm:$0xff]  ;;  %v280_v15 = vld [vmem:[#allocation6 + $0x30] sm:$0xff]  ;;  %v279_v16 = vld [vmem:[#allocation6 + $0x28] sm:$0xff] }
  0x36   :  { %705 = vmatprep.subr.mxu0 %v864_v0  ;;  %712 = vmatprep.subr.mxu1 %v864_v0  ;;  %v278_v17 = vld [vmem:[#allocation6 + $0x20] sm:$0xff]  ;;  %v935_v45 = vsub.s32 0, %v265_v43  ;;  %v261_v48 = vld [vmem:[#allocation7 + $0x9] sm:$0x1]  ;;  %v403_v57 = vld [vmem:[#allocation6 + $0x58] sm:$0xff] }
  0x37   :  { %706 = vmatpush3.msra.mxu0 %v71_v2  ;;  %713 = vmatpush3.msra.mxu1 %v157_v5  ;;  %v670_v18 = vld [vmem:[#allocation7 + $0x1] ss:$0 sm:$0xff]  ;;  %v257_v44 = vld [vmem:[#allocation7 + $0x5] sm:$0x1]  ;;  %v402_v58 = vld [vmem:[#allocation6 + $0x50] sm:$0xff] }
  0x38   :  { %708 = vmatmul.mubr.msk.f32.vlgmr.msra.gmra.mxu0 %vm78_vm1, %v70_v3  ;;  %721 = vmatprep.subr.mxu0 %v864_v0  ;;  %v401_v59 = vld [vmem:[#allocation6 + $0x48] sm:$0xff]  ;;  %v400_v60 = vld [vmem:[#allocation6 + $0x40] sm:$0xff] }
  0x39   :  { %729 = vmatprep.mubr.msk.f32.mxu0 %vm865_vm0, %v864_v0  ;;  %714 = vmatprep.subr.mxu1 %v864_v0  ;;  %v672_v61 = vld [vmem:[#allocation7 + $0x2] ss:$0 sm:$0xff] }
  0x3a   :  { %715 = vmatpush3.msra.mxu1 %v156_v6  ;;  %722 = vmatpush3.msra.mxu0 %v281_v14 }
  0x3b   :  { %716 = vmatprep.subr.mxu1 %v864_v0  ;;  %723 = vmatprep.subr.mxu0 %v864_v0 }
  0x3c   :  { %717 = vmatpush3.msra.mxu1 %v155_v7  ;;  %724 = vmatpush3.msra.mxu0 %v280_v15 }
  0x3d   :  { %732 = vmatprep.subr.mxu1 %v864_v0  ;;  %725 = vmatprep.subr.mxu0 %v864_v0 }
  0x3e   :  { %726 = vmatpush3.msra.mxu0 %v279_v16 }
  0x3f   :  { %727 = vmatprep.subr.mxu0 %v864_v0 }
  0x40   :  { %728 = vmatpush3.msra.mxu0 %v278_v17 }
  0x41   :  { %743 = vmatprep.subr.mxu0 %v864_v0 }
  0xf8   :  { %v148_v9 = vpop.f32.mrf.mxu0 }
  0xf9   :  { %v149_v10 = vadd.f32 %v668_v8, %v148_v9 }
  0xfa   :  { %v709_v11 = vpop.f32.mrf.mxu0 }
  0xfb   :  { %vm152_vm2 = vcmp.gt.f32.partialorder %v149_v10, 0.0  ;;  %v153_v12 = vmul.f32 0.2, %v149_v10 }
  0xfd   :  { %v154_v13 = vsel %vm152_vm2, %v149_v10, %v153_v12 }
  0xfe   :  { %719 = vmatmul.mubr.msk.f32.vlgmr.msra.gmra.mxu1 %vm164_vm3, %v154_v13 }
  0xff   :  { %740 = vmatprep.mubr.msk.f32.mxu1 %vm865_vm0, %v864_v0  ;;  %733 = vmatpush3.msra.mxu1 %v403_v57 }
 0x100   :  { %734 = vmatprep.subr.mxu1 %v864_v0 }
 0x101   :  { %735 = vmatpush3.msra.mxu1 %v402_v58 }
 0x102   :  { %736 = vmatprep.subr.mxu1 %v864_v0 }
 0x103   :  { %737 = vmatpush3.msra.mxu1 %v401_v59 }
 0x104   :  { %738 = vmatprep.subr.mxu1 %v864_v0 }
 0x105   :  { %739 = vmatpush3.msra.mxu1 %v400_v60 }
 0x1be   :  { %v234_v19 = vpop.f32.mrf.mxu1 }
 0x1bf   :  { %v235_v20 = vadd.f32 %v670_v18, %v234_v19 }
 0x1c0   :  { %v720_v21 = vpop.f32.mrf.mxu1 }
 0x1c1   :  { %v238_v22 = vsel %vm164_vm3, %v235_v20, 0.0  ;;  %v245_v23 = vmul.f32 %v235_v20, %v235_v20 }
 0x1c2   :  { %v239_v24 = vrot.slane %v238_v22, 4 }
 0x1c3   :  { %v246_v25 = vsel %vm164_vm3, %v245_v23, 0.0 }
 0x1c4   :  { %v240_v26 = vadd.f32 %v239_v24, %v238_v22  ;;  %v247_v27 = vrot.slane %v246_v25, 4  ;;  %v379_v22 = vld [vmem:[#allocation7 + $0x6] sm:$0x1] }
 0x1c6   :  { %v241_v28 = vrot.slane %v240_v26, 2  ;;  %v248_v29 = vadd.f32 %v247_v27, %v246_v25  ;;  %v383_v25 = vld [vmem:[#allocation7 + $0xa] sm:$0x1] }
 0x1c8   :  { %v242_v30 = vadd.f32 %v241_v28, %v240_v26  ;;  %v249_v31 = vrot.slane %v248_v29, 2 }
 0x1ca   :  { %v243_v32 = vrot.slane %v242_v30, 1  ;;  %v250_v33 = vadd.f32 %v249_v31, %v248_v29 }
 0x1cc   :  { %v244_v34 = vadd.f32 %v243_v32, %v242_v30  ;;  %v251_v35 = vrot.slane %v250_v33, 1 }
 0x1ce   :  { %v252_v36 = vadd.f32 %v251_v35, %v250_v33  ;;  %v253_v37 = vmul.f32 0.125, %v244_v34  ;;  %v525_v34 = vld [vmem:[#allocation6 + $0x78] sm:$0xff]  ;;  %v524_v35 = vld [vmem:[#allocation6 + $0x70] sm:$0xff] }
 0x1d0   :  { %v254_v38 = vmul.f32 0.125, %v252_v36  ;;  %v255_v39 = vmul.f32 %v253_v37, %v253_v37  ;;  %v523_v36 = vld [vmem:[#allocation6 + $0x68] sm:$0xff] }
 0x1d2   :  { %v256_v40 = vsub.f32 %v254_v38, %v255_v39  ;;  %v674_v38 = vld [vmem:[#allocation7 + $0x3] ss:$0 sm:$0xff] }
 0x1d4   :  { %v258_v41 = vadd.f32 0.8, %v256_v40 }
 0x1d6   :  { %762 = vrsqrt.f32 %v258_v41 }
 0x1e3   :  { %v763_v46 = vpop.eup %762 }
 0x1e4   :  { %v260_v47 = vmul.f32 %v763_v46, %v257_v44 }
 0x1e6   :  { %v262_v49 = vmul.f32 %v260_v47, %v253_v37  ;;  %v267_v50 = vrot.slane %v260_v47, %v935_v45  ;;  %v522_v37 = vld [vmem:[#allocation6 + $0x60] sm:$0xff] }
 0x1e8   :  { %v263_v51 = vsub.f32 %v261_v48, %v262_v49  ;;  %v268_v52 = vmul.f32 %v267_v50, %v235_v20 }
 0x1ea   :  { %v272_v53 = vrot.slane %v263_v51, %v935_v45 }
 0x1ec   :  { %v273_v54 = vadd.f32 %v272_v53, %v268_v52 }
 0x1ee   :  { %vm274_vm4 = vcmp.gt.f32.partialorder %v273_v54, 0.0  ;;  %v275_v55 = vmul.f32 0.2, %v273_v54 }
 0x1f0   :  { %v276_v56 = vsel %vm274_vm4, %v273_v54, %v275_v55 }
 0x1f1   :  { %730 = vmatmul.mubr.msk.f32.vlgmr.msra.gmra.mxu0 %vm164_vm3, %v276_v56 }
 0x1f2   :  { %751 = vmatprep.mubr.msk.f32.mxu0 %vm865_vm0, %v864_v0  ;;  %744 = vmatpush3.msra.mxu0 %v525_v34 }
 0x1f3   :  { %745 = vmatprep.subr.mxu0 %v864_v0 }
 0x1f4   :  { %746 = vmatpush3.msra.mxu0 %v524_v35  ;;  %v623_v35 = vld [vmem:[#allocation7 + $0x8] sm:$0x1] }
 0x1f5   :  { %747 = vmatprep.subr.mxu0 %v864_v0 }
 0x1f6   :  { %748 = vmatpush3.msra.mxu0 %v523_v36 }
 0x1f7   :  { %749 = vmatprep.subr.mxu0 %v864_v0 }
 0x1f8   :  { %750 = vmatpush3.msra.mxu0 %v522_v37 }
 0x2b1   :  { %v356_v62 = vpop.f32.mrf.mxu0 }
 0x2b2   :  { %v357_v63 = vadd.f32 %v672_v61, %v356_v62  ;;  %v501_v62 = vld [vmem:[#allocation7 + $0x7] sm:$0x1] }
 0x2b3   :  { %v731_v1 = vpop.f32.mrf.mxu0 }
 0x2b4   :  { %v360_v2 = vsel %vm164_vm3, %v357_v63, 0.0  ;;  %v367_v3 = vmul.f32 %v357_v63, %v357_v63 }
 0x2b5   :  { %v361_v4 = vrot.slane %v360_v2, 4 }
 0x2b6   :  { %v368_v5 = vsel %vm164_vm3, %v367_v3, 0.0 }
 0x2b7   :  { %v362_v6 = vadd.f32 %v361_v4, %v360_v2  ;;  %v369_v7 = vrot.slane %v368_v5, 4  ;;  %v505_v2 = vld [vmem:[#allocation7 + $0xb] sm:$0x1] }
 0x2b9   :  { %v363_v8 = vrot.slane %v362_v6, 2  ;;  %v370_v9 = vadd.f32 %v369_v7, %v368_v5 }
 0x2bb   :  { %v364_v10 = vadd.f32 %v363_v8, %v362_v6  ;;  %v371_v11 = vrot.slane %v370_v9, 2 }
 0x2bd   :  { %v365_v12 = vrot.slane %v364_v10, 1  ;;  %v372_v13 = vadd.f32 %v371_v11, %v370_v9  ;;  %v676_v11 = vld [vmem:[#allocation7 + $0x4] ss:$0 sm:$0xff] }
 0x2bf   :  { %v366_v14 = vadd.f32 %v365_v12, %v364_v10  ;;  %v373_v15 = vrot.slane %v372_v13, 1 }
 0x2c1   :  { %v374_v16 = vadd.f32 %v373_v15, %v372_v13  ;;  %v375_v17 = vmul.f32 0.125, %v366_v14 }
 0x2c3   :  { %v376_v18 = vmul.f32 0.125, %v374_v16  ;;  %v377_v19 = vmul.f32 %v375_v17, %v375_v17 }
 0x2c5   :  { %v378_v20 = vsub.f32 %v376_v18, %v377_v19 }
 0x2c7   :  { %v380_v21 = vadd.f32 0.8, %v378_v20 }
 0x2c9   :  { %764 = vrsqrt.f32 %v380_v21 }
 0x2d6   :  { %v765_v23 = vpop.eup %764 }
 0x2d7   :  { %v382_v24 = vmul.f32 %v765_v23, %v379_v22 }
 0x2d9   :  { %v384_v26 = vmul.f32 %v382_v24, %v375_v17  ;;  %v389_v27 = vrot.slane %v382_v24, %v935_v45 }
 0x2db   :  { %v385_v28 = vsub.f32 %v383_v25, %v384_v26  ;;  %v390_v29 = vmul.f32 %v389_v27, %v357_v63 }
 0x2dd   :  { %v394_v30 = vrot.slane %v385_v28, %v935_v45 }
 0x2df   :  { %v395_v31 = vadd.f32 %v394_v30, %v390_v29 }
 0x2e1   :  { %vm396_vm5 = vcmp.gt.f32.partialorder %v395_v31, 0.0  ;;  %v397_v32 = vmul.f32 0.2, %v395_v31 }
 0x2e3   :  { %v398_v33 = vsel %vm396_vm5, %v395_v31, %v397_v32 }
 0x2e4   :  { %741 = vmatmul.mubr.msk.f32.vlgmr.msra.gmra.mxu1 %vm164_vm3, %v398_v33 }
 0x3a4   :  { %v478_v39 = vpop.f32.mrf.mxu1 }
 0x3a5   :  { %v479_v40 = vadd.f32 %v674_v38, %v478_v39  ;;  %v627_v38 = vld [vmem:[#allocation7 + $0xc] sm:$0x1] }
 0x3a6   :  { %v742_v41 = vpop.f32.mrf.mxu1 }
 0x3a7   :  { %v482_v42 = vsel %vm164_vm3, %v479_v40, 0.0  ;;  %v489_v43 = vmul.f32 %v479_v40, %v479_v40 }
 0x3a8   :  { %v483_v44 = vrot.slane %v482_v42, 4 }
 0x3a9   :  { %v490_v46 = vsel %vm164_vm3, %v489_v43, 0.0 }
 0x3aa   :  { %v484_v47 = vadd.f32 %v483_v44, %v482_v42  ;;  %v491_v48 = vrot.slane %v490_v46, 4 }
 0x3ac   :  { %v485_v49 = vrot.slane %v484_v47, 2  ;;  %v492_v50 = vadd.f32 %v491_v48, %v490_v46 }
 0x3ae   :  { %v486_v51 = vadd.f32 %v485_v49, %v484_v47  ;;  %v493_v52 = vrot.slane %v492_v50, 2  ;;  %v678_v47 = vld [vmem:[#allocation7 + $0xe] ss:$0 sm:$0xff] }
 0x3b0   :  { %v487_v53 = vrot.slane %v486_v51, 1  ;;  %v494_v54 = vadd.f32 %v493_v52, %v492_v50 }
 0x3b2   :  { %v488_v0 = vadd.f32 %v487_v53, %v486_v51  ;;  %v495_v55 = vrot.slane %v494_v54, 1  ;;  %v679_v51 = vld [vmem:[#allocation7 + $0xd] ss:$0 sm:$0xff] }
 0x3b4   :  { %v496_v56 = vadd.f32 %v495_v55, %v494_v54  ;;  %v497_v57 = vmul.f32 0.125, %v488_v0 }
 0x3b6   :  { %v498_v58 = vmul.f32 0.125, %v496_v56  ;;  %v499_v59 = vmul.f32 %v497_v57, %v497_v57 }
 0x3b8   :  { %v500_v60 = vsub.f32 %v498_v58, %v499_v59 }
 0x3ba   :  { %v502_v61 = vadd.f32 0.8, %v500_v60 }
 0x3bc   :  { %766 = vrsqrt.f32 %v502_v61 }
 0x3c9   :  { %v767_v63 = vpop.eup %766 }
 0x3ca   :  { %v504_v1 = vmul.f32 %v767_v63, %v501_v62 }
 0x3cc   :  { %v506_v3 = vmul.f32 %v504_v1, %v497_v57  ;;  %v511_v4 = vrot.slane %v504_v1, %v935_v45 }
 0x3ce   :  { %v507_v5 = vsub.f32 %v505_v2, %v506_v3  ;;  %v512_v6 = vmul.f32 %v511_v4, %v479_v40 }
 0x3d0   :  { %v516_v7 = vrot.slane %v507_v5, %v935_v45 }
 0x3d2   :  { %v517_v8 = vadd.f32 %v516_v7, %v512_v6 }
 0x3d4   :  { %vm518_vm6 = vcmp.gt.f32.partialorder %v517_v8, 0.0  ;;  %v519_v9 = vmul.f32 0.2, %v517_v8 }
 0x3d6   :  { %v520_v10 = vsel %vm518_vm6, %v517_v8, %v519_v9 }
 0x3d7   :  { %752 = vmatmul.mubr.msk.f32.vlgmr.msra.gmra.mxu0 %vm164_vm3, %v520_v10 }
 0x497   :  { %v600_v12 = vpop.f32.mrf.mxu0 }
 0x498   :  { %v601_v13 = vadd.f32 %v676_v11, %v600_v12 }
 0x499   :  { %v753_v14 = vpop.f32.mrf.mxu0 }
 0x49a   :  { %v604_v15 = vsel %vm164_vm3, %v601_v13, 0.0  ;;  %v611_v16 = vmul.f32 %v601_v13, %v601_v13 }
 0x49b   :  { %v605_v17 = vrot.slane %v604_v15, 4 }
 0x49c   :  { %v612_v18 = vsel %vm164_vm3, %v611_v16, 0.0 }
 0x49d   :  { %v606_v19 = vadd.f32 %v605_v17, %v604_v15  ;;  %v613_v20 = vrot.slane %v612_v18, 4 }
 0x49f   :  { %v607_v21 = vrot.slane %v606_v19, 2  ;;  %v614_v22 = vadd.f32 %v613_v20, %v612_v18 }
 0x4a1   :  { %v608_v23 = vadd.f32 %v607_v21, %v606_v19  ;;  %v615_v24 = vrot.slane %v614_v22, 2 }
 0x4a3   :  { %v609_v25 = vrot.slane %v608_v23, 1  ;;  %v616_v26 = vadd.f32 %v615_v24, %v614_v22 }
 0x4a5   :  { %v610_v27 = vadd.f32 %v609_v25, %v608_v23  ;;  %v617_v28 = vrot.slane %v616_v26, 1 }
 0x4a7   :  { %v618_v29 = vadd.f32 %v617_v28, %v616_v26  ;;  %v619_v30 = vmul.f32 0.125, %v610_v27 }
 0x4a9   :  { %v620_v31 = vmul.f32 0.125, %v618_v29  ;;  %v621_v32 = vmul.f32 %v619_v30, %v619_v30 }
 0x4ab   :  { %v622_v33 = vsub.f32 %v620_v31, %v621_v32 }
 0x4ad   :  { %v624_v34 = vadd.f32 0.8, %v622_v33 }
 0x4af   :  { %768 = vrsqrt.f32 %v624_v34 }
 0x4bc   :  { %v769_v36 = vpop.eup %768 }
 0x4bd   :  { %v626_v37 = vmul.f32 %v769_v36, %v623_v35 }
 0x4bf   :  { %v628_v39 = vmul.f32 %v626_v37, %v619_v30  ;;  %v633_v40 = vrot.slane %v626_v37, %v935_v45 }
 0x4c1   :  { %v629_v41 = vsub.f32 %v627_v38, %v628_v39  ;;  %v634_v42 = vmul.f32 %v633_v40, %v601_v13 }
 0x4c3   :  { %v638_v43 = vrot.slane %v629_v41, %v935_v45 }
 0x4c5   :  { %v639_v44 = vadd.f32 %v638_v43, %v634_v42 }
 0x4c7   :  { %vm640_vm7 = vcmp.gt.f32.partialorder %v639_v44, 0.0  ;;  %v641_v46 = vmul.f32 0.2, %v639_v44 }
 0x4c9   :  { %v642_v48 = vsel %vm640_vm7, %v639_v44, %v641_v46 }
 0x4ca   :  { %v648_v49 = vmul.f32 %v678_v47, %v642_v48 }
 0x4cc   :  { %v649_v50 = vsel %vm164_vm3, %v648_v49, 0.0 }
 0x4cd   :  { %650 = vadd.xlane.f32.xlu0 %v649_v50 }
 0x556   :  { %v651_v52 = vpop.xlane.xlu0 %650 }
 0x557   :  { %v657_v53 = vadd.f32 %v679_v51, %v651_v52 }
 0x559   :  { %770 = vtanh.f32 %v657_v53 }
 0x566   :  { %v771_v54 = vpop.eup %770 }
 0x567   :  { %660 = vst.msk [vmem:[%s970_s4] sm:$0xff] %vm659_vm8, %v771_v54 }
 0x568   :  { %665 = vsyncpa [#allocation3], 1 }
 0x569   :  { %666 = vsyncpa [#allocation5], 1 }
 0x56a   :  { %667 = vsyncpa [#allocation8], 1 }

</bundles_post_ra>
